<compile_context>
chip_gen: v7x
topology: tpu7x:2x2x1
jax: 0.10.0
libtpu: 0.0.40
codegen_flags: <defaults>
</compile_context>

<pallas_src>
import functools

import jax
import jax.numpy as jnp
from jax import lax
from jax.experimental import pallas as pl
from jax.experimental.pallas import tpu as pltpu

MARGIN = 1.0


def _round_up(x, m):
    return ((x + m - 1) // m) * m


def _default_num_splits():
    """2 on megacore parts (2 TensorCores per device), else 1."""
    try:
        kind = jax.devices()[0].device_kind.lower()
    except Exception:  # no devices / unexpected backend -> safe default
        return 1
    return 2 if any(t in kind for t in ("v4", "v5p", "v5 p", "v7")) else 1


def _choose_tile_rows(batch, feat, x_itemsize, num_splits, *, budget_bytes,
                      n_buf, target_step_bytes, min_inner_steps):
    """Biggest batch tile whose full pipeline footprint fits budget_bytes."""
    # VMEM bytes per tile row:
    #   x0 + x1 : n_buf pipeline buffers each, feat * itemsize
    #   y       : n_buf buffers of a (tile_rows, 1) f32 block, lane-padded to 128
    #   acc     : one (tile_rows, 1) f32 scratch, lane-padded to 128
    per_row_vmem = 2 * n_buf * feat * x_itemsize + n_buf * 128 * 4 + 128 * 4
    tile_rows = max(8, (budget_bytes // per_row_vmem) // 8 * 8)

    rows_per_split = -(-batch // num_splits)
    tile_rows = min(tile_rows, _round_up(rows_per_split, 8))

    # Prefer >= min_inner_steps per split so double-buffering overlaps DMA and
    # compute -- but never shrink a step below ~target_step_bytes of x traffic.
    rows_for_min_steps = _round_up(-(-rows_per_split // min_inner_steps), 8)
    if rows_for_min_steps * 2 * feat * x_itemsize >= target_step_bytes:
        tile_rows = min(tile_rows, rows_for_min_steps)

    # Keep every block's start row inside the array (standard ragged-last-block
    # path); only bites for small batches.
    if batch >= 8:
        tile_rows = min(tile_rows, (batch // 8) * 8)
    return max(8, tile_rows)


def _siamese_loss_kernel(starts_ref, x0_ref, x1_ref, y_ref, out_ref, acc_ref, *,
                         batch, tile_rows, margin):
    s = pl.program_id(0)   # core-split index ("parallel")
    i = pl.program_id(1)   # tile index within the split ("arbitrary")

    @pl.when(i == 0)
    def _():
        acc_ref[...] = jnp.zeros_like(acc_ref)

    x0 = x0_ref[...].astype(jnp.float32)            # (TB, D)
    x1 = x1_ref[...].astype(jnp.float32)            # (TB, D)
    y = y_ref[...].astype(jnp.float32)              # (TB, 1)

    # L1 distance along the feature (lane) axis.
    # (MXU dot-with-ones alternative skipped: kernel is HBM-bound, XLU has slack.)
    d = jnp.sum(jnp.abs(x0 - x1), axis=1, keepdims=True)            # (TB, 1)
    pos = y * d * d                                                  # similar pairs
    neg = (1.0 - y) * jnp.square(jnp.maximum(margin - d, 0.0))       # dissimilar
    per_example = 0.5 * (pos + neg)                                  # (TB, 1)

    # Mask padded inner steps (this split has fewer blocks than the grid extent)
    # and rows past the logical batch (ragged last tile).
    start = starts_ref[s]
    count = starts_ref[s + 1] - start
    blk = start + i
    row = blk * tile_rows + lax.broadcasted_iota(jnp.int32, (tile_rows, 1), 0)
    valid = jnp.logical_and(i < count, row < batch)

    # Pure elementwise (VPU) accumulate; the cross-sublane reduce runs only once.
    acc_ref[...] += jnp.where(valid, per_example, 0.0)

    @pl.when(i == pl.num_programs(1) - 1)
    def _():
        total = jnp.sum(acc_ref[...], axis=0, keepdims=True)         # (1, 1)
        # Lane-dense (8, 128) output block; wrapper reads element [0, 0] per split.
        out_ref[...] = jnp.broadcast_to(total, out_ref.shape)


def siamese_loss(params, y, *, tile_rows=None, num_splits=None, margin=MARGIN,
                 cast_to_bf16=True, budget_bytes=16 * 1024 * 1024,
                 target_step_bytes=4 * 1024 * 1024, min_inner_steps=4,
                 buffer_count=None, vmem_limit_bytes=48 * 1024 * 1024):
    """params = (x0, x1), each (B, D); y is (B,) or (B, 1) of {0., 1.}."""
    x0, x1 = params[0], params[1]
    B, D = x0.shape
    y2d = jnp.reshape(y, (B, 1)).astype(jnp.float32)

    # Stream embeddings as bf16: the kernel sits on the HBM roofline, so halving
    # input bytes is ~1.9x wall on every generation (math stays f32 in-kernel).
    if cast_to_bf16 and x0.dtype == jnp.float32:
        x0 = x0.astype(jnp.bfloat16)
        x1 = x1.astype(jnp.bfloat16)
    itemsize = jnp.dtype(x0.dtype).itemsize

    if num_splits is None:
        num_splits = _default_num_splits()
    num_splits = max(1, int(num_splits))

    n_buf = 2 if buffer_count is None else int(buffer_count)
    if tile_rows is None:
        tile_rows = _choose_tile_rows(
            B, D, itemsize, num_splits, budget_bytes=budget_bytes, n_buf=n_buf,
            target_step_bytes=target_step_bytes, min_inner_steps=min_inner_steps)
    tile_rows = max(8, _round_up(int(tile_rows), 8))

    total_blocks = -(-B // tile_rows)
    num_splits = min(num_splits, total_blocks)
    last_block = total_blocks - 1

    # Distribute blocks across splits as evenly as possible (remainder spread one
    # block at a time); 'starts' carries a sentinel so the kernel can read counts.
    base, rem = divmod(total_blocks, num_splits)
    counts = [base + (1 if s < rem else 0) for s in range(num_splits)]
    starts = [0]
    for c in counts:
        starts.append(starts[-1] + c)
    blocks_per_split = max(counts)
    starts_arr = jnp.asarray(starts, dtype=jnp.int32)

    def x_index(s, i, starts_sm):
        # Clamp so padded inner steps never DMA out of range; masked in-kernel.
        return (jnp.minimum(starts_sm[s] + i, last_block), 0)

    def out_index(s, i, starts_sm):
        return (s, 0)   # same block across the inner axis => resident accumulator

    x_spec_kwargs = {}
    if buffer_count is not None:
        # Optional deeper pipeline (e.g. 3 on v7x if DMA is still exposed).
        x_spec_kwargs["pipeline_mode"] = pl.Buffered(int(buffer_count))
    x_spec = pl.BlockSpec((tile_rows, D), x_index, **x_spec_kwargs)
    y_spec = pl.BlockSpec((tile_rows, 1), x_index)

    kernel = functools.partial(
        _siamese_loss_kernel, batch=B, tile_rows=tile_rows, margin=margin)

    cost = pl.CostEstimate(
        flops=int(3 * B * D + 8 * B),
        transcendentals=0,
        bytes_accessed=int(2 * B * D * itemsize + B * 4
                           + num_splits * 8 * 128 * 4))

    out = pl.pallas_call(
        kernel,
        out_shape=jax.ShapeDtypeStruct((num_splits * 8, 128), jnp.float32),
        grid_spec=pltpu.PrefetchScalarGridSpec(
            num_scalar_prefetch=1,
            grid=(num_splits, blocks_per_split),
            in_specs=[x_spec, x_spec, y_spec],
            out_specs=pl.BlockSpec((8, 128), out_index),
            scratch_shapes=[pltpu.VMEM((tile_rows, 1), jnp.float32)],
        ),
        compiler_params=pltpu.CompilerParams(
            dimension_semantics=("parallel", "arbitrary"),
            vmem_limit_bytes=vmem_limit_bytes,
        ),
        cost_estimate=cost,
    )(starts_arr, x0, x1, y2d)

    partials = out[::8, 0]            # one partial sum per core-split
    return jnp.sum(partials) / B      # divide by the FULL batch size


def siamese_loss_ref(params, y):
    """Pure-JAX reference for correctness checking."""
    x0, x1 = params[0], params[1]
    yv = y.reshape(-1).astype(jnp.float32)
    d = jnp.sum(jnp.abs(x0.astype(jnp.float32) - x1.astype(jnp.float32)), axis=1)
    per = 0.5 * (yv * d * d + (1.0 - yv) * jnp.square(jnp.maximum(MARGIN - d, 0.0)))
    return jnp.mean(per)


if __name__ == "__main__":
    key = jax.random.PRNGKey(0)
    k0, k1, ky = jax.random.split(key, 3)

    # Small shapes; B chosen NOT a multiple of the tile so the ragged-last-tile
    # mask, the uneven block->split remainder, and the masked padded step are all
    # exercised (3 blocks of 8 rows over 2 splits in the forced config below).
    B, D = 20, 128
    x0 = jax.random.normal(k0, (B, D), dtype=jnp.float32) * 0.1
    x1 = jax.random.normal(k1, (B, D), dtype=jnp.float32) * 0.1
    y = (jax.random.uniform(ky, (B,)) > 0.5).astype(jnp.float32)  # 1 = similar pair

    ref = siamese_loss_ref((x0, x1), y)

    # 1) Exact f32 path with a forced small-tile / 2-split config (remainder +
    #    ragged + masked-padded-step coverage).  Tight tolerance.
    loss_f32 = siamese_loss((x0, x1), y, tile_rows=8, num_splits=2,
                            cast_to_bf16=False)
    jax.block_until_ready(loss_f32)
    assert jnp.allclose(loss_f32, ref, rtol=1e-4, atol=1e-5), (loss_f32, ref)

    # 2) Default fast path: auto byte-sized tiling, generation-aware splits,
    #    bf16 input streaming.  Looser tolerance for the bf16 cast.
    loss_def = siamese_loss((x0, x1), y)
    jax.block_until_ready(loss_def)
    assert jnp.allclose(loss_def, ref, rtol=2e-2, atol=1e-3), (loss_def, ref)

    print("KERNEL_OK")
</pallas_src>

<mosaic_0001>
module attributes {stable_mosaic.version = 11 : i64} {
  func.func @_siamese_loss_kernel(%arg0: i32, %arg1: i32, %arg2: memref<3xi32, #tpu.memory_space<smem>>, %arg3: memref<8x128xf32, #tpu.memory_space<vmem>>, %arg4: memref<8x128xf32, #tpu.memory_space<vmem>>, %arg5: memref<8x1xf32, #tpu.memory_space<vmem>>, %arg6: memref<8x128xf32, #tpu.memory_space<vmem>>, %arg7: memref<8x1xf32, #tpu.memory_space<vmem>>) attributes {dimension_semantics = [#tpu.dimension_semantics<parallel>, #tpu.dimension_semantics<arbitrary>], iteration_bounds = array<i64: 2, 2>, scalar_prefetch = 1 : i64, scratch_operands = 1 : i64, tpu.core_type = #tpu.core_type<tc>, window_params = [{transform_indices = @transform_0, window_bounds = array<i64: 8, 128>}, {transform_indices = @transform_1, window_bounds = array<i64: 8, 128>}, {transform_indices = @transform_2, window_bounds = array<i64: 8, 1>}, {transform_indices = @transform_3, window_bounds = array<i64: 8, 128>}]} {
    %c0_i32 = arith.constant 0 : i32
    %0 = arith.cmpi eq, %arg1, %c0_i32 : i32
    %1 = arith.extui %0 : i1 to i32
    %c0_i32_0 = arith.constant 0 : i32
    %2 = arith.cmpi ne, %1, %c0_i32_0 : i32
    scf.if %2 {
      %cst_17 = arith.constant 0.000000e+00 : f32
      %47 = vector.broadcast %cst_17 : f32 to vector<8x1xf32>
      %c0_18 = arith.constant 0 : index
      %c0_19 = arith.constant 0 : index
      %48 = vector.load %arg7[%c0_18, %c0_19] : memref<8x1xf32, #tpu.memory_space<vmem>>, vector<8x1xf32>
      tpu.vector_store %arg7[%c0_18, %c0_19], %47 {strides = array<i32>} : memref<8x1xf32, #tpu.memory_space<vmem>>, vector<8x1xf32>,
    } else {
    }
    %c0 = arith.constant 0 : index
    %c0_1 = arith.constant 0 : index
    %3 = vector.load %arg3[%c0, %c0_1] : memref<8x128xf32, #tpu.memory_space<vmem>>, vector<8x128xf32>
    %c0_2 = arith.constant 0 : index
    %c0_3 = arith.constant 0 : index
    %4 = vector.load %arg4[%c0_2, %c0_3] : memref<8x128xf32, #tpu.memory_space<vmem>>, vector<8x128xf32>
    %c0_4 = arith.constant 0 : index
    %c0_5 = arith.constant 0 : index
    %5 = vector.load %arg5[%c0_4, %c0_5] : memref<8x1xf32, #tpu.memory_space<vmem>>, vector<8x1xf32>
    %6 = arith.subf %3, %4 : vector<8x128xf32>
    %7 = math.absf %6 : vector<8x128xf32>
    %cst = arith.constant dense<0.000000e+00> : vector<8xf32>
    %8 = vector.multi_reduction <add>, %7, %cst [1] : vector<8x128xf32> to vector<8xf32>
    %9 = vector.shape_cast %8 : vector<8xf32> to vector<8x1xf32>
    %10 = arith.mulf %5, %9 : vector<8x1xf32>
    %11 = arith.mulf %10, %9 : vector<8x1xf32>
    %cst_6 = arith.constant 1.000000e+00 : f32
    %12 = vector.broadcast %cst_6 : f32 to vector<8x1xf32>
    %13 = arith.subf %12, %5 : vector<8x1xf32>
    %cst_7 = arith.constant 1.000000e+00 : f32
    %14 = vector.broadcast %cst_7 : f32 to vector<8x1xf32>
    %15 = arith.subf %14, %9 : vector<8x1xf32>
    %cst_8 = arith.constant 0.000000e+00 : f32
    %16 = vector.broadcast %cst_8 : f32 to vector<8x1xf32>
    %17 = arith.maximumf %15, %16 : vector<8x1xf32>
    %18 = arith.mulf %17, %17 : vector<8x1xf32>
    %19 = arith.mulf %13, %18 : vector<8x1xf32>
    %20 = arith.addf %11, %19 : vector<8x1xf32>
    %cst_9 = arith.constant 5.000000e-01 : f32
    %21 = vector.broadcast %cst_9 : f32 to vector<8x1xf32>
    %22 = arith.mulf %21, %20 : vector<8x1xf32>
    %23 = arith.index_cast %arg0 : i32 to index
    %24 = memref.load %arg2[%23] : memref<3xi32, #tpu.memory_space<smem>>
    %c1_i32 = arith.constant 1 : i32
    %25 = arith.addi %arg0, %c1_i32 : i32
    %26 = arith.index_cast %25 : i32 to index
    %27 = memref.load %arg2[%26] : memref<3xi32, #tpu.memory_space<smem>>
    %28 = arith.subi %27, %24 : i32
    %29 = arith.addi %24, %arg1 : i32
    %c8_i32 = arith.constant 8 : i32
    %30 = arith.muli %29, %c8_i32 : i32
    %31 = tpu.iota {dimensions = array<i32: 0>} : vector<8x1xi32>
    %32 = vector.broadcast %30 : i32 to vector<8x1xi32>
    %33 = arith.addi %32, %31 : vector<8x1xi32>
    %34 = arith.cmpi slt, %arg1, %28 : i32
    %c20_i32 = arith.constant 20 : i32
    %35 = vector.broadcast %c20_i32 : i32 to vector<8x1xi32>
    %36 = arith.cmpi slt, %33, %35 : vector<8x1xi32>
    %37 = vector.broadcast %34 : i1 to vector<8x1xi1>
    %38 = arith.andi %37, %36 : vector<8x1xi1>
    %c0_10 = arith.constant 0 : index
    %c0_11 = arith.constant 0 : index
    %39 = vector.load %arg7[%c0_10, %c0_11] : memref<8x1xf32, #tpu.memory_space<vmem>>, vector<8x1xf32>
    %cst_12 = arith.constant 0.000000e+00 : f32
    %40 = vector.broadcast %cst_12 : f32 to vector<8x1xf32>
    %41 = arith.select %38, %22, %40 : vector<8x1xi1>, vector<8x1xf32>
    %42 = arith.addf %39, %41 : vector<8x1xf32>
    %c0_13 = arith.constant 0 : index
    %c0_14 = arith.constant 0 : index
    %43 = vector.load %arg7[%c0_13, %c0_14] : memref<8x1xf32, #tpu.memory_space<vmem>>, vector<8x1xf32>
    tpu.vector_store %arg7[%c0_13, %c0_14], %42 {strides = array<i32>} : memref<8x1xf32, #tpu.memory_space<vmem>>, vector<8x1xf32>,
    %c1_i32_15 = arith.constant 1 : i32
    %44 = arith.cmpi eq, %arg1, %c1_i32_15 : i32
    %45 = arith.extui %44 : i1 to i32
    %c0_i32_16 = arith.constant 0 : i32
    %46 = arith.cmpi ne, %45, %c0_i32_16 : i32
    scf.if %46 {
      %c0_17 = arith.constant 0 : index
      %c0_18 = arith.constant 0 : index
      %47 = vector.load %arg7[%c0_17, %c0_18] : memref<8x1xf32, #tpu.memory_space<vmem>>, vector<8x1xf32>
      %cst_19 = arith.constant dense<0.000000e+00> : vector<1xf32>
      %48 = vector.multi_reduction <add>, %47, %cst_19 [0] : vector<8x1xf32> to vector<1xf32>
      %49 = vector.shape_cast %48 : vector<1xf32> to vector<1x1xf32>
      %50 = vector.shape_cast %49 : vector<1x1xf32> to vector<1x1xf32>
      %51 = vector.broadcast %50 : vector<1x1xf32> to vector<8x128xf32>
      %c0_20 = arith.constant 0 : index
      %c0_21 = arith.constant 0 : index
      %52 = vector.load %arg6[%c0_20, %c0_21] : memref<8x128xf32, #tpu.memory_space<vmem>>, vector<8x128xf32>
      tpu.vector_store %arg6[%c0_20, %c0_21], %51 {strides = array<i32>} : memref<8x128xf32, #tpu.memory_space<vmem>>, vector<8x128xf32>,
    } else {
    }
    return
  }
  func.func @transform_0(%arg0: i32, %arg1: i32, %arg2: memref<3xi32, #tpu.memory_space<smem>>) -> (i32, i32) {
    %0 = arith.index_cast %arg0 : i32 to index
    %1 = memref.load %arg2[%0] : memref<3xi32, #tpu.memory_space<smem>>
    %2 = arith.addi %1, %arg1 : i32
    %c2_i32 = arith.constant 2 : i32
    %3 = arith.minsi %2, %c2_i32 : i32
    %c0_i32 = arith.constant 0 : i32
    %c0_i32_0 = arith.constant 0 : i32
    return %3, %c0_i32 : i32, i32
  }
  func.func @transform_1(%arg0: i32, %arg1: i32, %arg2: memref<3xi32, #tpu.memory_space<smem>>) -> (i32, i32) {
    %0 = arith.index_cast %arg0 : i32 to index
    %1 = memref.load %arg2[%0] : memref<3xi32, #tpu.memory_space<smem>>
    %2 = arith.addi %1, %arg1 : i32
    %c2_i32 = arith.constant 2 : i32
    %3 = arith.minsi %2, %c2_i32 : i32
    %c0_i32 = arith.constant 0 : i32
    %c0_i32_0 = arith.constant 0 : i32
    return %3, %c0_i32 : i32, i32
  }
  func.func @transform_2(%arg0: i32, %arg1: i32, %arg2: memref<3xi32, #tpu.memory_space<smem>>) -> (i32, i32) {
    %0 = arith.index_cast %arg0 : i32 to index
    %1 = memref.load %arg2[%0] : memref<3xi32, #tpu.memory_space<smem>>
    %2 = arith.addi %1, %arg1 : i32
    %c2_i32 = arith.constant 2 : i32
    %3 = arith.minsi %2, %c2_i32 : i32
    %c0_i32 = arith.constant 0 : i32
    %c0_i32_0 = arith.constant 0 : i32
    return %3, %c0_i32 : i32, i32
  }
  func.func @transform_3(%arg0: i32, %arg1: i32, %arg2: memref<3xi32, #tpu.memory_space<smem>>) -> (i32, i32) {
    %c0_i32 = arith.constant 0 : i32
    %c0_i32_0 = arith.constant 0 : i32
    return %arg0, %c0_i32 : i32, i32
  }
}

</mosaic_0001>

<bundles_post_ra>
// kernel: tpu_custom_call.1
= control target key start
LH: loop header
LB: loop body
LE: loop exit
PB: predicated region body
PF: predicated region fallthrough
CT: control target
= control target key end

     0   :  { %s1076_s0 = inlined_call_operand.vmem [shape: s32[3], index: 0, kind: input, shape index: {}]   ;;  %s1077_s1 = inlined_call_operand.vmem [shape: f32[20,128], index: 1, kind: input, shape index: {}]   ;;  %s1078_s2 = inlined_call_operand.hbm [shape: f32[20,128], index: 2, kind: input, shape index: {}]   ;;  %s1079_s3 = inlined_call_operand.vmem [shape: f32[20,1], index: 3, kind: input, shape index: {}]   ;;  %s1080_s4 = inlined_call_operand.hbm [shape: f32[16,128], index: 4, kind: output, shape index: {}]  }
   0x1   :  { %s9_s17 = sshll.u32 %s1076_s0, 4  ;;  %s10_s17 = int_to_ptr.vmem [resolvable:$true] %s9_s17 }
   0x2   :  { %s625_s18 = scalar_lea.vmem %s10_s17, 16  ;;  %p630_p1 = scmp.lt.s32.totalorder %s10_s17, %s10_s17 }
   0x3   :  { %p626_p0 = scmp.ne.s32.totalorder %s10_s17, %s625_s18  ;;  %p631_p2 = scmp.lt.s32.totalorder %s625_s18, %s625_s18 }
   0x5   :  { %p632_p3 = por %p631_p2, %p630_p1 }
   0x7   :  { %p633_p4 = pnand %p632_p3, %p626_p0 }
   0x9   :  { %636 = shalt.err (!%p633_p4)  }
   0xa   :  { %s793_s19 = smov [#allocation4]  }
   0xb   :  { %12 = dma.vmem_to_smem %s10_s17, 16, %s793_s19, [#allocation3] }
   0xc   :  { %739 = dma.done.wait [#allocation3], 16 }
   0xd   :  { %740 = vsyncadd [#allocation3], 4294967280 }
   0xe   :  { %14 = sfence }
   0xf   :  { %15 = vsyncpa [#allocation6], 0 }
  0x10   :  { %17 = vsyncpa [#allocation6 + $0x1], 0 }
  0x11   :  { %18 = vsyncpa [#allocation7], 0 }
  0x12   :  { %20 = vsyncpa [#allocation7 + $0x1], 0  ;;  %s826_s20 = smov 0   ;;  %s828_s0 = smov 0  }
  0x13   :  { %s830_s21 = smov 0   ;;  %s832_s22 = smov 0  }
  0x14   :  { %s834_s23 = smov 0   ;;  %s836_s24 = smov 0  }
  0x15   :  { %s838_s25 = smov 0   ;;  %s840_s26 = smov 0  }
  0x16   :  { %s842_s27 = smov 0   ;;  %s844_s28 = smov 0  }
  0x17   :  { %s846_s29 = smov 0  }
  0x18 LB: > { %1087 = sst [smem:[#allocation14_spill]] %s787_s28  ;;  %s491_s30 = sadd.s32 4294967295, %s791_s29   ;;  %s791_s29 = sphi %s846_s29, %s26_s29   ;;  %s787_s28 = sphi %s844_s28, %s1104_s28   ;;  %s783_s27 = sphi %s842_s27, %s1112_s27   ;;  %s779_s26 = sphi %s840_s26, %s1102_s26   ;;  %s775_s25 = sphi %s838_s25, %s1111_s25   ;;  %s771_s24 = sphi %s836_s24, %s1110_s24   ;;  %s767_s23 = sphi %s834_s23, %s1109_s23   ;;  %s763_s22 = sphi %s832_s22, %s1108_s22   ;;  %s759_s21 = sphi %s830_s21, %s1107_s21   ;;  %s755_s0 = sphi %s828_s0, %s1106_s0   ;;  %s751_s20 = sphi %s826_s20, %s1105_s20  }
  0x19   : > { %s35_s5 = sadd.s32 1, %s783_s27  ;;  %s38_s6 = sadd.s32 1, %s787_s28 }
  0x1a   : > { %p36_p5 = scmp.ge.s32.totalorder %s35_s5, 2  ;;  %s76_s7 = sld [smem:[#allocation4 + %s787_s28]] }
  0x1b   : > { %s492_s8 = sadd.s32 4294967294, %s791_s29   ;;  %p94_p6 = scmp.ne.s32.totalorder %s771_s24, %s767_s23 }
  0x1c   : > { %s1114_s5 = smov (%p36_p5, %s35_s5), 0  ;;  %s1116_s6 = smov (!%p36_p5, %s38_s6), %s787_s28 }
  0x1d   : > { %1088 = sst [smem:[#allocation15_spill]] %s1114_s5  ;;  %p95_p7 = scmp.eq.s32.totalorder %s791_s29, 0 }
  0x1e   : > { %p100_p8 = scmp.ne.s32.totalorder %s767_s23, %s763_s22  ;;  %p40_p9 = scmp.ge.s32.totalorder %s1116_s6, 2 }
  0x1f   : > { %p101_p10 = scmp.eq.s32.totalorder %s491_s30, 0  ;;  %p892_p11 = por %p95_p7, %p94_p6 }
  0x20   : > { %s77_s9 = sadd.s32 %s783_s27, %s76_s7  ;;  %s1118_s6 = smov (%p40_p9, %s1116_s6), 0 }
  0x21   : > { %1090 = sst [smem:[#allocation16_spill]] %s1118_s6  ;;  %p78_p12 = scmp.lt.s32.totalorder %s77_s9, 2 }
  0x22   : > { %p898_p13 = por %p101_p10, %p100_p8  ;;  %s80_s12 = sld [smem:[#allocation4 + %s1118_s6]] }
  0x23   : > { %s144_s13 = ssub.s32 %s787_s28, %s1118_s6  ;;  %s1120_s9 = smov (!%p78_p12, %s77_s9), 2 }
  0x24   : > { %s1091_s11 = scalar_select %p898_p13, 1, 0 }
  0x25   : > { %p145_p0 = scmp.eq.s32.totalorder %s144_s13, 0  ;;  %s147_s14 = sadd.s32 1, %s759_s21 }
  0x26   : > { %p157_p1 = scmp.ne.s32.totalorder %s759_s21, %s755_s0  ;;  %p158_p2 = scmp.eq.s32.totalorder %s491_s30, 3 }
  0x27   : > { %s909_s15 = scalar_select %p145_p0, %s759_s21, %s147_s14  }
  0x28   : > { %p911_p3 = por %p158_p2, %p157_p1  ;;  %p163_p4 = scmp.ne.s32.totalorder %s755_s0, %s751_s20 }
  0x29   : > { %s81_s17 = sadd.s32 %s80_s12, %s1114_s5  ;;  %p164_p5 = scmp.eq.s32.totalorder %s492_s8, 3 }
  0x2a   : > { %s1092_s16 = scalar_select %p911_p3, 1, 0 }
  0x2b   : > { %p82_p6 = scmp.lt.s32.totalorder %s81_s17, 2  ;;  %p918_p7 = por %p164_p5, %p163_p4 }
  0x2c   : > { %p531_p8 = scmp.lt.s32.totalorder %s791_s29, 4  ;;  %s87_s30 = sadd.s32 1, %s771_s24 }
  0x2d   : > { %s1093_s18 = scalar_select %p918_p7, 1, 0 }
  0x2e   : > { %s1122_s17 = smov (!%p82_p6, %s81_s17), 2  ;;  %p925_p9 = pnand %p531_p8, %p892_p11 }
  0x2f   : > { %s84_s22 = ssub.s32 %s1120_s9, %s1122_s17  ;;  %s199_s7 = sand.u32 1, %s771_s24  }
  0x30   : > { %p85_p10 = scmp.eq.s32.totalorder %s84_s22, 0  ;;  %p497_p12 = scmp.ge.s32.totalorder %s791_s29, 1 }
  0x31   : > { %s515_s8 = scalar_select %p892_p11, [#allocation4], [#allocation9] }
  0x32   : > { %s932_s12 = scalar_select %p85_p10, %s771_s24, %s87_s30  }
  0x33   : > { %s516_s13 = scalar_select %p892_p11, %s787_s28, 0 }
  0x34   : > { %1095 = sst [smem:[#allocation17_spill]] %s932_s12  ;;  %s1124_s8 = smov (!%p531_p8, %s515_s8), [#allocation10] }
  0x35   : > { %s1126_s13 = smov (!%p531_p8, %s516_s13), 0  ;;  %s495_s6 = sshll.u32 %s199_s7, 3 }
  0x36   : > { %s204_s14 = sld [smem:[%s1124_s8 + %s1126_s13]]  ;;  %p234_p0 = scmp.lt.s32.totalorder %s791_s29, 5 }
  0x37   : > { %s203_s17 = scalar_lea.vmem [#allocation5], %s495_s6  ;;  %s200_s8 = scalar_lea.sflag [#allocation6], %s199_s7 }
  0x38   : > { %p941_p1 = pnand %p497_p12, %p234_p0  ;;  %s214_s22 = sshll.u32 %s203_s17, 4  ;;  %s946_s22 = int_to_ptr.vmem [resolvable:$true] %s214_s22 }
  0x39   : > { %p639_p4 = pneg %p925_p9 }
  0x3c   : > { %s205_s9 = sadd.s32 %s783_s27, %s204_s14 }
  0x3d   : > { %p206_p2 = scmp.lt.s32.totalorder %s205_s9, 2 }
  0x3f   : > { %s1128_s9 = smov (!%p206_p2, %s205_s9), 2 }
  0x40   : > { %s496_s10 = sshll.u32 %s1128_s9, 7  ;;  %s642_s9 = scalar_lea.hbm %s1078_s2, 384 }
  0x41   : > { %s951_s12 = scalar_lea.hbm %s1078_s2, %s496_s10 }
  0x42   : > { %s637_s13 = scalar_lea.hbm %s951_s12, 128  ;;  %p643_p8 = scmp.lt.u32.totalorder %s951_s12, %s1078_s2 }
  0x43   : > { %p638_p11 = scmp.ne.s32.totalorder %s951_s12, %s637_s13  ;;  %p644_p10 = scmp.lt.u32.totalorder %s642_s9, %s637_s13 }
  0x44   : > { %p646_p0 = scmp.lt.u32.totalorder %s637_s13, %s951_s12 }
  0x45   : > { %p640_p5 = pnand %p639_p4, %p638_p11  ;;  %p645_p12 = por %p644_p10, %p643_p8 }
  0x47   : > { %p641_p6 = pneg %p640_p5  ;;  %p647_p2 = por %p646_p0, %p645_p12 }
  0x49   : > { %p648_p7 = pnand %p647_p2, %p641_p6 }
  0x4b   : > { %651 = shalt.err (!%p648_p7)
}
  0x4c   : > { %s652_s7 = scalar_lea.vmem %s946_s22, 128  ;;  %s794_s10 = smov [#allocation5]  }
  0x4d   : > { %p653_p11 = scmp.ne.s32.totalorder %s946_s22, %s652_s7  ;;  %s657_s30 = sshll.u32 %s794_s10, 4  ;;  %s658_s30 = int_to_ptr.vmem [resolvable:$false] %s657_s30 }
  0x4e   : > { %s659_s6 = scalar_lea.vmem %s658_s30, 256  ;;  %p660_p13 = scmp.lt.s32.totalorder %s946_s22, %s658_s30 }
  0x4f   : > { %p655_p5 = pnand %p653_p11, %p639_p4  ;;  %p661_p8 = scmp.lt.s32.totalorder %s659_s6, %s652_s7 }
  0x51   : > { %p656_p3 = pneg %p655_p5  ;;  %p662_p10 = por %p661_p8, %p660_p13 }
  0x53   : > { %p663_p12 = pnand %p662_p10, %p656_p3 }
  0x55   : > { %666 = shalt.err (!%p663_p12)
}
  0x56   : > { %526 = dma.hbm_to_vmem [thread:$0]  (!%p925_p9), %s951_s12, 128, %s946_s22, %s200_s8  }
  0x57   : > { %238 = sbr.rel (%p941_p1) target bundleno = 448 (0x1c0), region = 32  ;;  %s240_s13 = sand.u32 (!%p941_p1), 1, %s767_s23  }
  0x58   : > { %s981_s14 = sshll.u32 (!%p941_p1), %s240_s13, 3  ;;  %s241_s9 = scalar_lea.sflag (!%p941_p1), [#allocation6], %s240_s13 }
  0x59   : > { %s244_s28 = scalar_lea.vmem (!%p941_p1), [#allocation5], %s981_s14  ;;  %p1097_p7 = scmp.ne.s32.totalorder (!%p941_p1), %s1091_s11, 0 }
  0x5e   : > { %742 = dma.done.wait (%p1097_p7), %s241_s9, 128  }
  0x5f   : > { %744 = vsyncadd (%p1097_p7), %s241_s9, 4294967168  ;;  %s1086_s5 = sand.u32 1, %s755_s0   ;;  %s283_s19 = sld [smem:[#allocation4 + %s779_s26]] }
  0x60   : > { %s299_s12 = sld [smem:[#allocation4 + %s779_s26]]  ;;  %s993_s22 = sshll.u32 %s1086_s5, 3 }
  0x61   : > { %s282_s5 = scalar_lea.vmem [#allocation8], %s993_s22  ;;  %p508_p9 = scmp.ne.s32.totalorder %s775_s25, 0 }
  0x62   : > { %vm315_vm0 = vcmask (!%p508_p9), 7168   ;;  %v795_v0 = vmov (!%p508_p9), 0.0  }
  0x63   : > { %316 = vst.msk [vmem:[#allocation2] sm:$0xff] (!%p508_p9), %vm315_vm0, %v795_v0 }
  0x65   : > { %s284_s8 = sadd.s32 %s775_s25, %s283_s19 }
  0x66   : > { %s300_s17 = sadd.s32 %s775_s25, %s299_s12  ;;  %p285_p13 = scmp.lt.s32.totalorder %s284_s8, 2 }
  0x67   : > { %p301_p3 = scmp.lt.s32.totalorder %s300_s17, 2  ;;  %314 = sbr.rel (%p508_p9) target bundleno = 110 (0x6e), region = 40 }
  0x68   : > { %s1130_s8 = smov (!%p285_p13, %s284_s8), 2 }
  0x69   : > { %s1132_s17 = smov (!%p301_p3, %s300_s17), 2  ;;  %s1134_s8 = smov (!%p285_p13, %s1130_s8), 2 }
  0x6a   : > { %s1136_s17 = smov (!%p301_p3, %s1132_s17), 2  ;;  %s503_s11 = sshll.u32 %s1134_s8, 3 }
  0x6b   : > { %s290_s30 = scalar_lea.vmem %s1077_s1, %s503_s11  ;;  %s507_s6 = sshll.u32 %s1136_s17, 3 }
  0x6c   : > { %s306_s9 = scalar_lea.vmem %s1079_s3, %s507_s6 }
  0x6e PF: > { %v317_v1 = vld [vmem:[%s290_s30] sm:$0xff]  ;;  %v318_v2 = vld [vmem:[%s244_s28] sm:$0xff]  ;;  %s334_s19 = sadd.s32 1, %s779_s26  ;;  %s333_s12 = sld [smem:[#allocation4 + %s779_s26]]  ;;  %v339_v5 = vlaneseq  ;;  %vm352_vm4 = vcmask 7168  }
  0x6f   : > { %v320_v3 = vsub.f32 %v317_v1, %v318_v2  ;;  %s335_s8 = sld [smem:[#allocation4 + %s334_s19]]  ;;  %v319_v7 = vld [vmem:[%s306_s9] sm:$0xff]  ;;  %p510_p4 = scmp.ne.s32.totalorder %s775_s25, 1 }
  0x70   : > { %v340_v6 = vshrl.u32 %v339_v5, 7  ;;  %v326_v12 = vsub.f32 1.0, %v319_v7  ;;  %v349_v21 = vld [vmem:[#allocation2] sm:$0xff]  ;;  %v796_v25 = vmov (!%p510_p4), 0  }
  0x71   : > { %v321_v4 = vand.u32 2147483647, %v320_v3  ;;  %624 = vset.pattern.permute.xlu0 (!%p510_p4), %v796_v25 }
  0x73   : > { %322 = vadd.xlane.f32.xlu0 %v321_v4 }
  0x74   : > { %s337_s11 = sadd.s32 %s775_s25, %s333_s12 }
  0x75   : > { %s336_s17 = ssub.s32 %s335_s8, %s333_s12  ;;  %s509_s7 = sshll.u32 %s337_s11, 3 }
  0x76   : > { %p343_p1 = scmp.lt.s32.totalorder %s775_s25, %s336_s17  ;;  %v341_v9 = vstv %s509_s7 }
  0x77   : > { %v342_v14 = vadd.s32 %v341_v9, %v340_v6 }
  0x78   : > { %s345_s10 = scalar_select %p343_p1, 1, 0 }
  0x79   : > { %vm344_vm1 = vcmp.lt.s32.totalorder %v342_v14, 20 }
  0x7a   : > { %v346_v15 = vstv %s345_s10 }
  0x7b   : > { %vm347_vm2 = vcmp.eq.s32.totalorder %v346_v15, 1 }
  0x7c   : > { %vm348_vm3 = vmand %vm347_vm2, %vm344_vm1 }
 0x100   : > { %v323_v8 = vpop.xlane.xlu0 %322 }
 0x101   : > { %v327_v10 = vsub.f32 1.0, %v323_v8  ;;  %v324_v11 = vmul.f32 %v323_v8, %v319_v7 }
 0x103   : > { %v328_v13 = vmax.f32 %v327_v10, 0.0  ;;  %v325_v17 = vmul.f32 %v324_v11, %v323_v8 }
 0x105   : > { %v329_v16 = vmul.f32 %v328_v13, %v328_v13 }
 0x107   : > { %v330_v18 = vmul.f32 %v329_v16, %v326_v12 }
 0x109   : > { %v331_v19 = vadd.f32 %v330_v18, %v325_v17 }
 0x10a   : > { %357 = sbr.rel (%p510_p4) target bundleno = 422 (0x1a6), region = 44 }
 0x10b   : > { %v332_v20 = vmul.f32 0.5, %v331_v19 }
 0x10d   : > { %v350_v22 = vsel %vm348_vm3, %v332_v20, 0.0 }
 0x10e   : > { %v351_v23 = vadd.f32 %v350_v22, %v349_v21 }
 0x110   : > { %353 = vst.msk [vmem:[#allocation2] sm:$0xff] %vm352_vm4, %v351_v23 }
 0x117   : > { %v358_v24 = vld [vmem:[#allocation2] sm:$0xff] }
 0x118   : > { %v359_v26 = vsel %vm352_vm4, %v358_v24, 0.0 }
 0x119   : > { %v360_v27 = vrot.slane %v359_v26, 4 }
 0x11b   : > { %v361_v28 = vadd.f32 %v360_v27, %v359_v26 }
 0x11d   : > { %v362_v29 = vrot.slane %v361_v28, 2 }
 0x11f   : > { %v363_v30 = vadd.f32 %v362_v29, %v361_v28 }
 0x121   : > { %v364_v31 = vrot.slane %v363_v30, 1 }
 0x123   : > { %v365_v32 = vadd.f32 %v364_v31, %v363_v30 }
 0x125   : > { %368 = vperm.xlu0 %624, %v365_v32  }
 0x1a4   : > { %v369_v33 = vpop.permute.xlu0 %368 }
 0x1a5   : > { %371 = vst [vmem:[%s282_s5] sm:$0xff] %v369_v33 }
 0x1a6 PF: > { %s512_s25 = sshll.u32 %s779_s26, 7  ;;  %s386_s13 = sshll.u32 %s282_s5, 4  ;;  %s387_s13 = int_to_ptr.vmem [resolvable:$true] %s386_s13 }
 0x1a7   : > { %s1016_s6 = scalar_lea.hbm %s1080_s4, %s512_s25  ;;  %s1098_s14 = sand.u32 1, %s755_s0  }
 0x1a8   : > { %s373_s9 = scalar_lea.sflag [#allocation7], %s1098_s14  ;;  %s667_s19 = scalar_lea.vmem %s387_s13, 128 }
 0x1a9   : > { %p668_p6 = scmp.ne.s32.totalorder %s387_s13, %s667_s19  ;;  %p1099_p0 = scmp.ne.s32.totalorder %s1092_s16, 0 }
 0x1aa   : > { %s797_s12 = smov [#allocation8]  }
 0x1ab   : > { %p669_p2 = pnand %p668_p6, %p1099_p0  ;;  %s671_s8 = sshll.u32 %s797_s12, 4  ;;  %s672_s8 = int_to_ptr.vmem [resolvable:$false] %s671_s8 }
 0x1ac   : > { %s673_s17 = scalar_lea.vmem %s672_s8, 256  ;;  %p674_p5 = scmp.lt.s32.totalorder %s387_s13, %s672_s8 }
 0x1ad   : > { %p670_p11 = pneg %p669_p2  ;;  %p675_p8 = scmp.lt.s32.totalorder %s673_s17, %s667_s19 }
 0x1af   : > { %p676_p10 = por %p675_p8, %p674_p5 }
 0x1b1   : > { %p677_p12 = pnand %p676_p10, %p670_p11 }
 0x1b3   : > { %680 = shalt.err (!%p677_p12)
}
 0x1b4   : > { %s681_s26 = scalar_lea.hbm %s1016_s6, 128  ;;  %s685_s11 = scalar_lea.hbm %s1080_s4, 256 }
 0x1b5   : > { %p682_p7 = scmp.ne.s32.totalorder %s1016_s6, %s681_s26  ;;  %p686_p9 = scmp.lt.u32.totalorder %s1016_s6, %s1080_s4 }
 0x1b6   : > { %p687_p1 = scmp.lt.u32.totalorder %s685_s11, %s681_s26  ;;  %p689_p6 = scmp.lt.u32.totalorder %s681_s26, %s1016_s6 }
 0x1b7   : > { %p683_p13 = pnand %p682_p7, %p1099_p0 }
 0x1b8   : > { %p688_p4 = por %p687_p1, %p686_p9 }
 0x1b9   : > { %p684_p3 = pneg %p683_p13 }
 0x1ba   : > { %p690_p2 = por %p689_p6, %p688_p4 }
 0x1bc   : > { %p691_p11 = pnand %p690_p2, %p684_p3 }
 0x1be   : > { %694 = shalt.err (!%p691_p11)
}
 0x1bf   : > { %519 = dma.vmem_to_hbm [thread:$0]  (%p1099_p0), %s387_s13, 128, %s1016_s6, %s373_s9  }
 0x1c0 PF: > { %p532_p5 = scmp.ge.s32.totalorder %s791_s29, 2  ;;  %s398_s25 = sand.u32 1, %s751_s20  }
 0x1c1   : > { %p1100_p8 = scmp.ne.s32.totalorder %s1093_s18, 0  ;;  %s399_s28 = scalar_lea.sflag [#allocation7], %s398_s25 }
 0x1c3   : > { %p528_p10 = pnand %p532_p5, %p1100_p8 }
 0x1c5   : > { %746 = dma.done.wait (!%p528_p10), %s399_s28, 128  }
 0x1c6   : > { %748 = vsyncadd (!%p528_p10), %s399_s28, 4294967168  ;;  %s26_s29 = sadd.s32 1, %s791_s29   ;;  %s1101_s16 = sld [smem:[#allocation17_spill]] }
 0x1c7   : > { %p23_p12 = scmp.ge.s32.totalorder %s26_s29, 6   ;;  %s1102_s26 = sld [smem:[#allocation14_spill]] }
 0x1c8   : > { %s1103_s30 = sld [smem:[#allocation15_spill]]  ;;  %s1104_s28 = sld [smem:[#allocation16_spill]] }
 0x1c9   : > { %s1105_s20 = smov %s755_s0  ;;  %s1106_s0 = smov %s759_s21 }
 0x1ca   : > { %s1107_s21 = smov %s909_s15  ;;  %s1108_s22 = smov %s767_s23 }
 0x1cb   : > { %s1109_s23 = smov %s771_s24  ;;  %s1111_s25 = smov %s783_s27 }
 0x1cc   : > { %s1110_s24 = smov %s1101_s16  ;;  %25 = sbr.rel (!%p23_p12) target bundleno = 24 (0x18), region = 91 }
 0x1ce   : > { %s1112_s27 = smov %s1103_s30 }
 0x1d3   :  { %404 = vsyncpa [#allocation6], 1 }
 0x1d4   :  { %406 = vsyncpa [#allocation6 + $0x1], 1 }
 0x1d5   :  { %407 = vsyncpa [#allocation7], 1 }
 0x1d6   :  { %409 = vsyncpa [#allocation7 + $0x1], 1 }

</bundles_post_ra>
